<compile_context>
chip_gen: v7x
topology: tpu7x:2x2x1
jax: 0.10.0
libtpu: 0.0.40
codegen_flags: <defaults>
</compile_context>

<pallas_src>
import functools

import jax
import jax.numpy as jnp
from jax.experimental import pallas as pl
from jax.experimental.pallas import tpu as pltpu


_MAX_TILE_B = 4096  # rows per grid step; ~0.5 MiB of x per buffer, tiny vs VMEM


def _elu(v):
    # ELU(alpha=1). exp only sees the clamped (<=0) values, so the unselected
    # branch can never overflow to inf. Math stays f32 (safe on v5e VPU/EUP).
    return jnp.where(v > 0, v, jnp.exp(jnp.minimum(v, 0.0)) - 1.0)


def _actor_kernel(x_ref, w1_ref, b1_ref, w2_ref, b2_ref, w3_ref, b3_ref,
                  out_ref):
    x = x_ref[...]                                           # [TB, latent]

    # Layer 1: X @ W1t + b1, ELU                             -> [TB, hidden]
    h = jnp.dot(x, w1_ref[...], preferred_element_type=jnp.float32) + b1_ref[...]
    h = _elu(h)

    # Layer 2: H1 @ W2t + b2, ELU                            -> [TB, hidden]
    h = jnp.dot(h, w2_ref[...], preferred_element_type=jnp.float32) + b2_ref[...]
    h = _elu(h)

    # Layer 3: H2 @ W3t + b3                                 -> [TB, actions]
    logits = jnp.dot(h, w3_ref[...], preferred_element_type=jnp.float32) + b3_ref[...]

    # Categorical(logits=...) normalization: row-wise log-softmax over the
    # action axis.  Per-row math only, so padded rows of a partial last tile
    # stay isolated and are dropped by the masked writeback.
    m = jnp.max(logits, axis=-1, keepdims=True)
    z = logits - m
    lse = jnp.log(jnp.sum(jnp.exp(z), axis=-1, keepdims=True))
    out_ref[...] = z - lse


def _round_up(n, m):
    return ((n + m - 1) // m) * m


def _num_tensorcores():
    """Best-effort detection of dual-TensorCore (megacore / v7x-style) chips."""
    try:
        kind = jax.devices()[0].device_kind.lower()
    except Exception:
        return 1
    return 2 if ("v7" in kind or "v4" in kind or "v5p" in kind) else 1


def _default_tile_b(batch, num_cores):
    """Batch-rows per grid step.

    Single TensorCore (v5e/v6e): one grid step whenever the batch fits the
    cap (each step costs ~0.35us fixed overhead, so don't split needlessly).
    Dual TensorCore (v7x-style): exactly `num_cores` steps for large batches
    so the "parallel" grid axis shards across both cores.
    """
    if num_cores > 1 and batch > 256:
        return min(_MAX_TILE_B, _round_up(pl.cdiv(batch, num_cores), 128))
    if batch <= _MAX_TILE_B:
        return batch          # block dim == full array dim: always legal
    return _MAX_TILE_B        # multiple of 8; last block may be partial


@functools.partial(jax.jit, static_argnames=("tile_b",))
def actor_forward(x, w1t, b1, w2t, b2, w3t, b3, *, tile_b=None):
    """Returns Categorical log-probabilities (normalized logits), shape [B, A].

    x:   [B, latent_dim]                (f32 or bf16; no wrapper casts added)
    w1t: [latent_dim, hidden]  b1: [1, hidden]
    w2t: [hidden, hidden]      b2: [1, hidden]
    w3t: [hidden, action_dim]  b3: [1, action_dim]
    (weights are stored pre-transposed relative to PyTorch's [out, in] layout;
     see make_actor_params.)
    """
    B, latent_dim = x.shape
    hidden = w1t.shape[1]
    action_dim = w3t.shape[1]

    if tile_b is None:
        tile_b = _default_tile_b(B, _num_tensorcores())
    num_steps = pl.cdiv(B, tile_b)

    # x tile: batch rides the (sublane) second-to-last axis, latent_dim (==
    # full array dim) on lanes.  For long grids request a 3-deep pipeline so
    # DMA issue latency is hidden (per-step compute is tiny).
    if num_steps >= 4:
        x_spec = pl.BlockSpec((tile_b, latent_dim), lambda i: (i, 0),
                              pipeline_mode=pl.Buffered(3))
    else:
        x_spec = pl.BlockSpec((tile_b, latent_dim), lambda i: (i, 0))

    # Weights/biases: whole array resident in VMEM (single copy, no per-step
    # DMA, no double-buffering of constants).
    resident = pl.BlockSpec(memory_space=pltpu.MemorySpace.VMEM)

    cost = pl.CostEstimate(
        flops=2 * B * (latent_dim * hidden + hidden * hidden
                       + hidden * action_dim),
        transcendentals=B * (2 * hidden + action_dim + 1),
        bytes_accessed=x.dtype.itemsize * B * latent_dim
                       + 4 * B * action_dim
                       + 4 * (latent_dim * hidden + hidden * hidden
                              + hidden * action_dim + 2 * hidden + action_dim),
    )

    return pl.pallas_call(
        _actor_kernel,
        out_shape=jax.ShapeDtypeStruct((B, action_dim), jnp.float32),
        grid_spec=pltpu.PrefetchScalarGridSpec(
            num_scalar_prefetch=0,
            grid=(num_steps,),
            in_specs=[
                x_spec,
                resident,   # w1t
                resident,   # b1
                resident,   # w2t
                resident,   # b2
                resident,   # w3t
                resident,   # b3
            ],
            out_specs=pl.BlockSpec((tile_b, action_dim), lambda i: (i, 0)),
        ),
        compiler_params=pltpu.CompilerParams(
            dimension_semantics=("parallel",)),
        cost_estimate=cost,
    )(x, w1t, b1, w2t, b2, w3t, b3)


def _orthogonal(key, out_features, in_features):
    """nn.init.orthogonal_ on a PyTorch-shaped [out, in] Linear weight."""
    return jax.nn.initializers.orthogonal()(key, (out_features, in_features),
                                            jnp.float32)


def make_actor_params(key, stoch_size, deter_size, action_dim, hidden_size):
    """Builds Actor parameters, stored in the kernel's [in, out] layout.

    The orthogonal init is drawn on the PyTorch [out, in] shape (matching
    nn.init.orthogonal_) and transposed once here, so the per-call hot path
    never transposes anything.  NOTE: for Dreamer-scale configs (hidden ~400,
    latent ~230) no dimension padding is needed -- Mosaic pads layouts to
    (8, 128) internally; do NOT round hidden up to 128 (that would add ~28%
    useless weight bytes/MXU work for a kernel that is HBM/dispatch bound).
    """
    latent_dim = stoch_size + deter_size
    k1, k2, k3 = jax.random.split(key, 3)
    w1t = _orthogonal(k1, hidden_size, latent_dim).T      # [L, H]
    b1 = jnp.zeros((1, hidden_size), jnp.float32)
    w2t = _orthogonal(k2, hidden_size, hidden_size).T      # [H, H]
    b2 = jnp.zeros((1, hidden_size), jnp.float32)
    w3t = _orthogonal(k3, action_dim, hidden_size).T       # [H, A]
    b3 = jnp.zeros((1, action_dim), jnp.float32)
    return w1t, b1, w2t, b2, w3t, b3


if __name__ == "__main__":
    # Small shapes consistent with the module's forward.
    stoch_size, deter_size = 8, 24          # latent_dim = 32
    action_dim = 6
    hidden_size = 32
    batch = 8

    key = jax.random.PRNGKey(0)
    pkey, xkey = jax.random.split(key)
    params = make_actor_params(pkey, stoch_size, deter_size, action_dim,
                               hidden_size)

    latent_state = jax.random.normal(
        xkey, (batch, stoch_size + deter_size), jnp.float32)

    log_probs = actor_forward(latent_state, *params)
    jax.block_until_ready(log_probs)
    assert log_probs.shape == (batch, action_dim)

    # Pure-JAX reference (ELU MLP + log-softmax) in PyTorch's x @ W.T
    # convention: our stored w*t == W.T, b* == bias row.
    w1t, b1, w2t, b2, w3t, b3 = params
    elu = lambda v: jnp.where(v > 0, v, jnp.exp(jnp.minimum(v, 0.0)) - 1.0)
    h = elu(latent_state @ w1t + b1)
    h = elu(h @ w2t + b2)
    raw = h @ w3t + b3
    ref = jax.nn.log_softmax(raw, axis=-1)
    assert jnp.allclose(log_probs, ref, atol=1e-5, rtol=1e-5), "mismatch vs reference"

    print("KERNEL_OK")
</pallas_src>

<mosaic_0001>
module attributes {stable_mosaic.version = 11 : i64} {
  func.func @_actor_kernel(%arg0: i32, %arg1: memref<8x32xf32, #tpu.memory_space<vmem>>, %arg2: memref<32x32xf32, #tpu.memory_space<vmem>>, %arg3: memref<1x32xf32, #tpu.memory_space<vmem>>, %arg4: memref<32x32xf32, #tpu.memory_space<vmem>>, %arg5: memref<1x32xf32, #tpu.memory_space<vmem>>, %arg6: memref<32x6xf32, #tpu.memory_space<vmem>>, %arg7: memref<1x6xf32, #tpu.memory_space<vmem>>, %arg8: memref<8x6xf32, #tpu.memory_space<vmem>>) attributes {dimension_semantics = [#tpu.dimension_semantics<parallel>], iteration_bounds = array<i64: 1>, scalar_prefetch = 0 : i64, scratch_operands = 0 : i64, tpu.core_type = #tpu.core_type<tc>, window_params = [{transform_indices = @transform_0, window_bounds = array<i64: 8, 32>}, {pipeline_mode = #tpu.pipeline_mode<synchronous>, transform_indices = @transform_1, window_bounds = array<i64: 32, 32>}, {pipeline_mode = #tpu.pipeline_mode<synchronous>, transform_indices = @transform_2, window_bounds = array<i64: 1, 32>}, {pipeline_mode = #tpu.pipeline_mode<synchronous>, transform_indices = @transform_3, window_bounds = array<i64: 32, 32>}, {pipeline_mode = #tpu.pipeline_mode<synchronous>, transform_indices = @transform_4, window_bounds = array<i64: 1, 32>}, {pipeline_mode = #tpu.pipeline_mode<synchronous>, transform_indices = @transform_5, window_bounds = array<i64: 32, 6>}, {pipeline_mode = #tpu.pipeline_mode<synchronous>, transform_indices = @transform_6, window_bounds = array<i64: 1, 6>}, {transform_indices = @transform_7, window_bounds = array<i64: 8, 6>}]} {
    %c0 = arith.constant 0 : index
    %c0_0 = arith.constant 0 : index
    %0 = vector.load %arg1[%c0, %c0_0] : memref<8x32xf32, #tpu.memory_space<vmem>>, vector<8x32xf32>
    %c0_1 = arith.constant 0 : index
    %c0_2 = arith.constant 0 : index
    %1 = vector.load %arg2[%c0_1, %c0_2] : memref<32x32xf32, #tpu.memory_space<vmem>>, vector<32x32xf32>
    %cst = arith.constant dense<0.000000e+00> : vector<8x32xf32>
    %2 = tpu.matmul %0, %1, %cst {dimension_numbers = #tpu.dot_dimension_numbers<[1], [0], [0], [1], [0, 0, 1, 1], [], []>} : vector<8x32xf32>, vector<32x32xf32>, vector<8x32xf32> -> vector<8x32xf32>
    %c0_3 = arith.constant 0 : index
    %c0_4 = arith.constant 0 : index
    %3 = vector.load %arg3[%c0_3, %c0_4] : memref<1x32xf32, #tpu.memory_space<vmem>>, vector<1x32xf32>
    %4 = vector.broadcast %3 : vector<1x32xf32> to vector<8x32xf32>
    %5 = arith.addf %2, %4 : vector<8x32xf32>
    %cst_5 = arith.constant 0.000000e+00 : f32
    %6 = vector.broadcast %cst_5 : f32 to vector<8x32xf32>
    %7 = arith.cmpf ogt, %5, %6 : vector<8x32xf32>
    %cst_6 = arith.constant 0.000000e+00 : f32
    %8 = vector.broadcast %cst_6 : f32 to vector<8x32xf32>
    %9 = arith.minimumf %5, %8 : vector<8x32xf32>
    %10 = math.exp %9 : vector<8x32xf32>
    %cst_7 = arith.constant 1.000000e+00 : f32
    %11 = vector.broadcast %cst_7 : f32 to vector<8x32xf32>
    %12 = arith.subf %10, %11 : vector<8x32xf32>
    %13 = arith.select %7, %5, %12 : vector<8x32xi1>, vector<8x32xf32>
    %c0_8 = arith.constant 0 : index
    %c0_9 = arith.constant 0 : index
    %14 = vector.load %arg4[%c0_8, %c0_9] : memref<32x32xf32, #tpu.memory_space<vmem>>, vector<32x32xf32>
    %cst_10 = arith.constant dense<0.000000e+00> : vector<8x32xf32>
    %15 = tpu.matmul %13, %14, %cst_10 {dimension_numbers = #tpu.dot_dimension_numbers<[1], [0], [0], [1], [0, 0, 1, 1], [], []>} : vector<8x32xf32>, vector<32x32xf32>, vector<8x32xf32> -> vector<8x32xf32>
    %c0_11 = arith.constant 0 : index
    %c0_12 = arith.constant 0 : index
    %16 = vector.load %arg5[%c0_11, %c0_12] : memref<1x32xf32, #tpu.memory_space<vmem>>, vector<1x32xf32>
    %17 = vector.broadcast %16 : vector<1x32xf32> to vector<8x32xf32>
    %18 = arith.addf %15, %17 : vector<8x32xf32>
    %cst_13 = arith.constant 0.000000e+00 : f32
    %19 = vector.broadcast %cst_13 : f32 to vector<8x32xf32>
    %20 = arith.cmpf ogt, %18, %19 : vector<8x32xf32>
    %cst_14 = arith.constant 0.000000e+00 : f32
    %21 = vector.broadcast %cst_14 : f32 to vector<8x32xf32>
    %22 = arith.minimumf %18, %21 : vector<8x32xf32>
    %23 = math.exp %22 : vector<8x32xf32>
    %cst_15 = arith.constant 1.000000e+00 : f32
    %24 = vector.broadcast %cst_15 : f32 to vector<8x32xf32>
    %25 = arith.subf %23, %24 : vector<8x32xf32>
    %26 = arith.select %20, %18, %25 : vector<8x32xi1>, vector<8x32xf32>
    %c0_16 = arith.constant 0 : index
    %c0_17 = arith.constant 0 : index
    %27 = vector.load %arg6[%c0_16, %c0_17] : memref<32x6xf32, #tpu.memory_space<vmem>>, vector<32x6xf32>
    %cst_18 = arith.constant dense<0.000000e+00> : vector<8x6xf32>
    %28 = tpu.matmul %26, %27, %cst_18 {dimension_numbers = #tpu.dot_dimension_numbers<[1], [0], [0], [1], [0, 0, 1, 1], [], []>} : vector<8x32xf32>, vector<32x6xf32>, vector<8x6xf32> -> vector<8x6xf32>
    %c0_19 = arith.constant 0 : index
    %c0_20 = arith.constant 0 : index
    %29 = vector.load %arg7[%c0_19, %c0_20] : memref<1x6xf32, #tpu.memory_space<vmem>>, vector<1x6xf32>
    %30 = vector.broadcast %29 : vector<1x6xf32> to vector<8x6xf32>
    %31 = arith.addf %28, %30 : vector<8x6xf32>
    %cst_21 = arith.constant dense<0xFF800000> : vector<8xf32>
    %32 = vector.multi_reduction <maximumf>, %31, %cst_21 [1] : vector<8x6xf32> to vector<8xf32>
    %33 = vector.shape_cast %32 : vector<8xf32> to vector<8x1xf32>
    %34 = vector.broadcast %33 : vector<8x1xf32> to vector<8x6xf32>
    %35 = arith.subf %31, %34 : vector<8x6xf32>
    %36 = math.exp %35 : vector<8x6xf32>
    %cst_22 = arith.constant dense<0.000000e+00> : vector<8xf32>
    %37 = vector.multi_reduction <add>, %36, %cst_22 [1] : vector<8x6xf32> to vector<8xf32>
    %38 = vector.shape_cast %37 : vector<8xf32> to vector<8x1xf32>
    %39 = math.log %38 : vector<8x1xf32>
    %40 = vector.broadcast %39 : vector<8x1xf32> to vector<8x6xf32>
    %41 = arith.subf %35, %40 : vector<8x6xf32>
    %c0_23 = arith.constant 0 : index
    %c0_24 = arith.constant 0 : index
    %42 = vector.load %arg8[%c0_23, %c0_24] : memref<8x6xf32, #tpu.memory_space<vmem>>, vector<8x6xf32>
    tpu.vector_store %arg8[%c0_23, %c0_24], %41 {strides = array<i32>} : memref<8x6xf32, #tpu.memory_space<vmem>>, vector<8x6xf32>,
    return
  }
  func.func @transform_0(%arg0: i32) -> (i32, i32) {
    %c0_i32 = arith.constant 0 : i32
    %c0_i32_0 = arith.constant 0 : i32
    return %arg0, %c0_i32 : i32, i32
  }
  func.func @transform_1(%arg0: i32) -> (i32, i32) {
    %c0_i32 = arith.constant 0 : i32
    %c0_i32_0 = arith.constant 0 : i32
    %c0_i32_1 = arith.constant 0 : i32
    return %c0_i32, %c0_i32_0 : i32, i32
  }
  func.func @transform_2(%arg0: i32) -> (i32, i32) {
    %c0_i32 = arith.constant 0 : i32
    %c0_i32_0 = arith.constant 0 : i32
    %c0_i32_1 = arith.constant 0 : i32
    return %c0_i32, %c0_i32_0 : i32, i32
  }
  func.func @transform_3(%arg0: i32) -> (i32, i32) {
    %c0_i32 = arith.constant 0 : i32
    %c0_i32_0 = arith.constant 0 : i32
    %c0_i32_1 = arith.constant 0 : i32
    return %c0_i32, %c0_i32_0 : i32, i32
  }
  func.func @transform_4(%arg0: i32) -> (i32, i32) {
    %c0_i32 = arith.constant 0 : i32
    %c0_i32_0 = arith.constant 0 : i32
    %c0_i32_1 = arith.constant 0 : i32
    return %c0_i32, %c0_i32_0 : i32, i32
  }
  func.func @transform_5(%arg0: i32) -> (i32, i32) {
    %c0_i32 = arith.constant 0 : i32
    %c0_i32_0 = arith.constant 0 : i32
    %c0_i32_1 = arith.constant 0 : i32
    return %c0_i32, %c0_i32_0 : i32, i32
  }
  func.func @transform_6(%arg0: i32) -> (i32, i32) {
    %c0_i32 = arith.constant 0 : i32
    %c0_i32_0 = arith.constant 0 : i32
    %c0_i32_1 = arith.constant 0 : i32
    return %c0_i32, %c0_i32_0 : i32, i32
  }
  func.func @transform_7(%arg0: i32) -> (i32, i32) {
    %c0_i32 = arith.constant 0 : i32
    %c0_i32_0 = arith.constant 0 : i32
    return %arg0, %c0_i32 : i32, i32
  }
}

</mosaic_0001>

<bundles_post_ra>
// kernel: actor_forward.1
= control target key start
LH: loop header
LB: loop body
LE: loop exit
PB: predicated region body
PF: predicated region fallthrough
CT: control target
= control target key end

     0   :  { %12 = vsyncpa [#allocation3], 0  ;;  %s589_s0 = inlined_call_operand.vmem [shape: f32[8,32], index: 0, kind: input, shape index: {}]   ;;  %s590_s1 = inlined_call_operand.vmem [shape: f32[32,32], index: 1, kind: input, shape index: {}]   ;;  %s591_s2 = inlined_call_operand.vmem [shape: f32[1,32], index: 2, kind: input, shape index: {}]   ;;  %s592_s3 = inlined_call_operand.hbm [shape: f32[32,32], index: 3, kind: input, shape index: {}]   ;;  %s593_s4 = inlined_call_operand.vmem [shape: f32[1,32], index: 4, kind: input, shape index: {}]   ;;  %s594_s5 = inlined_call_operand.vmem [shape: f32[32,6], index: 5, kind: input, shape index: {}]   ;;  %s595_s6 = inlined_call_operand.vmem [shape: f32[1,6], index: 6, kind: input, shape index: {}]   ;;  %s596_s7 = inlined_call_operand.hbm [shape: f32[8,6], index: 7, kind: output, shape index: {}]  }
   0x1   :  { %13 = vsyncpa [#allocation4], 0  ;;  %s473_s24 = smov [#allocation2]   ;;  %s425_s28 = scalar_lea.hbm %s592_s3, 512 }
   0x2   :  { %s25_s25 = sshll.u32 %s473_s24, 4  ;;  %p426_p0 = scmp.ne.s32.totalorder %s592_s3, %s425_s28  ;;  %s26_s25 = int_to_ptr.vmem [resolvable:$true] %s25_s25 }
   0x3   :  { %p429_p1 = scmp.lt.u32.totalorder %s425_s28, %s592_s3 }
   0x5   :  { %p431_p2 = pnand %p429_p1, %p426_p0 }
   0x7   :  { %434 = shalt.err (!%p431_p2)
}
   0x8   :  { %s435_s10 = scalar_lea.vmem %s26_s25, 512  ;;  %p440_p4 = scmp.lt.s32.totalorder %s26_s25, %s26_s25 }
   0x9   :  { %p436_p3 = scmp.ne.s32.totalorder %s26_s25, %s435_s10  ;;  %p441_p5 = scmp.lt.s32.totalorder %s435_s10, %s435_s10 }
   0xb   :  { %p442_p6 = por %p441_p5, %p440_p4 }
   0xd   :  { %p443_p7 = pnand %p442_p6, %p436_p3 }
   0xf   :  { %446 = shalt.err (!%p443_p7)
}
  0x10   :  { %s474_s11 = smov 128   ;;  %s475_s12 = smov 8  }
  0x11   :  { %31 = dma.hbm_to_vmem [thread:$0]  %s592_s3, 512, %s26_s25, [#allocation3], %s474_s11, %s474_s11, %s475_s12  }
  0x12   :  { %469 = dma.done.wait [#allocation3], 512  }
  0x13   :  { %470 = vsyncadd [#allocation3], 4294966784  ;;  %v476_v0 = vmov 0.0|0.0   ;;  %vm477_vm0 = vmmov 0   ;;  %v478_v1 = vmov 0.0   ;;  %v42_v2 = vld [vmem:[%s590_s1] sm:$0xff] }
  0x14   :  { %392 = vmatprep.subr.bf16.mxu0 %v476_v0  ;;  %367 = vmatprep.mubr.msk.f32.mxu0 %vm477_vm0, %v478_v1  ;;  %v43_v3 = vld [vmem:[%s590_s1 + $0x8] sm:$0xff]  ;;  %v44_v4 = vld [vmem:[%s590_s1 + $0x10] sm:$0xff]  ;;  %v45_v6 = vld [vmem:[%s590_s1 + $0x18] sm:$0xff]  ;;  %vm53_vm1 = vcmask 261120   ;;  %vm307_vm4 = vcmask 48128  }
  0x15   :  { %398 = vmatprep.subr.bf16.mxu1 %v476_v0  ;;  %378 = vmatprep.mubr.msk.f32.mxu1 %vm477_vm0, %v478_v1  ;;  %v393_v5 = vpack.c.bf16 %v43_v3, %v42_v2  ;;  %v396_v7 = vpack.c.bf16 %v45_v6, %v44_v4  ;;  %v41_v8 = vld [vmem:[%s589_s0] sm:$0xff]  ;;  %v134_v10 = vld [vmem:[#allocation2 + $0x8] sm:$0xff]  ;;  %v135_v11 = vld [vmem:[#allocation2 + $0x10] sm:$0xff] }
  0x16   :  { %v133_v9 = vld [vmem:[#allocation2] sm:$0xff]  ;;  %v136_v13 = vld [vmem:[#allocation2 + $0x18] sm:$0xff]  ;;  %v224_v25 = vld [vmem:[%s594_s5 + $0x8] sm:$0xff] }
  0x17   :  { %394 = vmatpush3.bf16.msra.mxu0 %v393_v5  ;;  %v399_v12 = vpack.c.bf16 %v134_v10, %v133_v9  ;;  %v402_v14 = vpack.c.bf16 %v136_v13, %v135_v11  ;;  %v336_v15 = vld [vmem:[%s591_s2] ss:$0 sm:$0xff]  ;;  %v225_v27 = vld [vmem:[%s594_s5 + $0x10] sm:$0xff]  ;;  %v226_v28 = vld [vmem:[%s594_s5 + $0x18] sm:$0xff] }
  0x18   :  { %395 = vmatprep.subr.bf16.mxu0 %v476_v0  ;;  %v223_v24 = vld [vmem:[%s594_s5] sm:$0xff]  ;;  %v408_v29 = vpack.c.bf16 %v226_v28, %v225_v27 }
  0x19   :  { %400 = vmatpush3.bf16.msra.mxu1 %v399_v12  ;;  %v405_v26 = vpack.c.bf16 %v224_v25, %v223_v24  ;;  %v339_v30 = vld [vmem:[%s593_s4] ss:$0 sm:$0xff]  ;;  %s479_s4 = smov [#allocation5]  }
  0x1a   :  { %401 = vmatprep.subr.bf16.mxu1 %v476_v0  ;;  %v342_v39 = vld [vmem:[%s595_s6] ss:$0 sm:$0xff]  ;;  %s327_s6 = sshll.u32 %s479_s4, 4  ;;  %s328_s6 = int_to_ptr.vmem [resolvable:$true] %s327_s6 }
  0x1b   :  { %397 = vmatpush3.bf16.msra.mxu0 %v396_v7  ;;  %s447_s11 = scalar_lea.vmem %s328_s6, 128  ;;  %p452_p9 = scmp.lt.s32.totalorder %s328_s6, %s328_s6 }
  0x1c   :  { %404 = vmatprep.subr.bf16.mxu0 %v476_v0  ;;  %p448_p8 = scmp.ne.s32.totalorder %s328_s6, %s447_s11  ;;  %p453_p10 = scmp.lt.s32.totalorder %s447_s11, %s447_s11 }
  0x1d   :  { %403 = vmatpush3.bf16.msra.mxu1 %v402_v14 }
  0x1e   :  { %368 = vmatmul.mubr.msk.f32.vlgmr.msra.gmra.mrb[0].mxu0 %vm53_vm1, %v41_v8  ;;  %p454_p11 = por %p453_p10, %p452_p9 }
  0x1f   :  { %389 = vmatprep.mubr.msk.f32.mxu0 %vm477_vm0, %v478_v1  ;;  %406 = vmatpush3.bf16.msra.mxu0 %v405_v26 }
  0x20   :  { %407 = vmatprep.subr.bf16.mxu0 %v476_v0  ;;  %p455_p12 = pnand %p454_p11, %p448_p8 }
  0x23   :  { %409 = vmatpush3.bf16.msra.mxu0 %v408_v29 }
  0xf1   :  { %v123_v16 = vpop.f32.mrb[0].mxu0 }
  0xf2   :  { %v124_v17 = vadd.f32 %v336_v15, %v123_v16  ;;  %v369_v18 = vpop.f32.mrb[1].mxu0 }
  0xf4   :  { %v128_v19 = vmin.f32 %v124_v17, 0.0  ;;  %vm127_vm2 = vcmp.gt.f32.partialorder %v124_v17, 0.0 }
  0xf6   :  { %v129_v20 = vmul.f32 1.442695, %v128_v19 }
  0xf8   :  { %417 = vpow2.f32 %v129_v20 }
 0x102   :  { %v418_v21 = vpop.eup %417 }
 0x103   :  { %v338_v22 = vadd.f32 -1.0, %v418_v21 }
 0x105   :  { %v132_v23 = vsel %vm127_vm2, %v124_v17, %v338_v22 }
 0x106   :  { %379 = vmatmul.mubr.msk.f32.vlgmr.msra.gmra.mrb[0].mxu1 %vm53_vm1, %v132_v23 }
 0x1d9   :  { %v213_v31 = vpop.f32.mrb[0].mxu1 }
 0x1da   :  { %v214_v32 = vadd.f32 %v339_v30, %v213_v31  ;;  %v380_v33 = vpop.f32.mrb[1].mxu1 }
 0x1dc   :  { %v218_v34 = vmin.f32 %v214_v32, 0.0  ;;  %vm217_vm3 = vcmp.gt.f32.partialorder %v214_v32, 0.0 }
 0x1de   :  { %v219_v35 = vmul.f32 1.442695, %v218_v34 }
 0x1e0   :  { %419 = vpow2.f32 %v219_v35 }
 0x1ea   :  { %v420_v36 = vpop.eup %419 }
 0x1eb   :  { %v341_v37 = vadd.f32 -1.0, %v420_v36 }
 0x1ed   :  { %v222_v38 = vsel %vm217_vm3, %v214_v32, %v341_v37 }
 0x1ee   :  { %390 = vmatmul.mubr.msk.f32.vlgmr.msra.gmra.mrb[2].mxu0 %vm53_vm1, %v222_v38 }
 0x2c1   :  { %v303_v40 = vpop.f32.mrb[2].mxu0 }
 0x2c2   :  { %v304_v41 = vadd.f32 %v342_v39, %v303_v40  ;;  %v391_v42 = vpop.f32.mrb[3].mxu0 }
 0x2c4   :  { %v308_v43 = vsel %vm307_vm4, %v304_v41, -inf }
 0x2c5   :  { %309 = vmax.xlane.f32.xlu0 %v308_v43 }
 0x352   :  { %v310_v44 = vpop.xlane.xlu0 %309 }
 0x353   :  { %v311_v45 = vsub.f32 %v304_v41, %v310_v44 }
 0x355   :  { %v312_v46 = vmul.f32 1.442695, %v311_v45 }
 0x357   :  { %421 = vpow2.f32 %v312_v46 }
 0x361   :  { %v422_v47 = vpop.eup %421 }
 0x362   :  { %v314_v48 = vsel %vm307_vm4, %v422_v47, 0.0 }
 0x363   :  { %315 = vadd.xlane.f32.xlu0 %v314_v48 }
 0x3f0   :  { %v316_v49 = vpop.xlane.xlu0 %315 }
 0x3f1   :  { %423 = vlog2.f32 %v316_v49 }
 0x3fb   :  { %v424_v50 = vpop.eup %423 }
 0x3fc   :  { %v318_v51 = vmul.f32 0.6931472, %v424_v50 }
 0x3fe   :  { %v319_v52 = vsub.f32 %v311_v45, %v318_v51 }
 0x400   :  { %320 = vst.msk [vmem:[#allocation5] sm:$0xff] %vm307_vm4, %v319_v52 }
 0x401   :  { %458 = shalt.err (!%p455_p12)
}
 0x402   :  { %s459_s14 = scalar_lea.hbm %s596_s7, 128 }
 0x403   :  { %p460_p13 = scmp.ne.s32.totalorder %s596_s7, %s459_s14  ;;  %p463_p0 = scmp.lt.u32.totalorder %s459_s14, %s596_s7 }
 0x405   :  { %p465_p1 = pnand %p463_p0, %p460_p13 }
 0x407   :  { %468 = shalt.err (!%p465_p1)
}
 0x408   :  { %330 = dma.vmem_to_hbm [thread:$0]  %s328_s6, 128, %s596_s7, [#allocation4]  }
 0x409   :  { %471 = dma.done.wait [#allocation4], 128  }
 0x40a   :  { %472 = vsyncadd [#allocation4], 4294967168 }
 0x40b   :  { %334 = vsyncpa [#allocation3], 1 }
 0x40c   :  { %335 = vsyncpa [#allocation4], 1 }

</bundles_post_ra>
